<compile_context>
chip_gen: v7x
topology: tpu7x:2x2x1
jax: 0.10.0
libtpu: 0.0.40
codegen_flags: <defaults>
</compile_context>

<pallas_src>
import functools

import jax
import jax.numpy as jnp
import numpy as np
from jax import lax
from jax.experimental import pallas as pl
from jax.experimental.pallas import tpu as pltpu


# ----------------------------- Pallas kernel --------------------------------
def pixelwise_kernel(x_ref, w0_ref, b0_ref, w1_ref, b1_ref, w2_ref, b2_ref,
                     o_ref, *, G, dpc, D, needs_mask):
    """One (batch, hw-tile, depth-chunk) grid step.

    x_ref : (1, G, dpc, hw)  float32   native-layout input block
    w0_ref: (G, dpc*16, dpc) bfloat16  per-group block-diagonal layer-0 weights
    b0_ref: (dpc*16, 1)      float32
    w1_ref: (dpc*8, dpc*16)  bfloat16  block-diagonal layer-1 weights
    b1_ref: (dpc*8, 1)       float32
    w2_ref: (dpc, dpc*8)     bfloat16  block-diagonal layer-2 weights
    b2_ref: (dpc, 1)         float32
    o_ref : (1, 1, hw)       float32   resident across the depth-chunk axis
    """
    c = pl.program_id(2)                      # depth-chunk index (reduction axis)

    dvalid = None
    if needs_mask:
        drow = lax.broadcasted_iota(jnp.int32, (dpc, 1), 0)
        dvalid = (c * dpc + drow) < D         # valid depth rows of this chunk

    def load_x(g):
        xg = x_ref[0, g]                      # (dpc, hw) float32
        if dvalid is not None:
            # Zero out-of-range depth rows so garbage (possibly NaN) in the
            # ragged tail block cannot leak through the block-diagonal dots.
            xg = jnp.where(dvalid, xg, 0.0)
        return xg.astype(jnp.bfloat16)

    # ---- layer 0: contract over the G channel groups (bf16 x bf16 -> f32) ---
    h0 = jnp.dot(w0_ref[0], load_x(0), preferred_element_type=jnp.float32)
    for g in range(1, G):
        h0 = h0 + jnp.dot(w0_ref[g], load_x(g),
                          preferred_element_type=jnp.float32)
    h0 = jnp.maximum(h0 + b0_ref[...], 0.0).astype(jnp.bfloat16)   # (dpc*16, hw)

    # ---- layer 1 -------------------------------------------------------------
    h1 = jnp.dot(w1_ref[...], h0, preferred_element_type=jnp.float32)
    h1 = jnp.maximum(h1 + b1_ref[...], 0.0).astype(jnp.bfloat16)   # (dpc*8, hw)

    # ---- layer 2: pre-sigmoid logits for every depth slice of the chunk -----
    lg = jnp.dot(w2_ref[...], h1, preferred_element_type=jnp.float32)
    lg = lg + b2_ref[...]                                          # (dpc, hw)

    if dvalid is not None:
        lg = jnp.where(dvalid, lg, -jnp.inf)   # exclude padded depth rows

    # Max over the chunk's depth slices (sublane reduction), folded into the
    # running max held directly in the resident output block.
    m = jnp.max(lg, axis=0, keepdims=True)                         # (1, hw)

    @pl.when(c == 0)
    def _():
        o_ref[0] = m

    @pl.when(c > 0)
    def _():
        o_ref[0] = jnp.maximum(o_ref[0], m)

    # Sigmoid applied exactly once:  max_d sigmoid(z_d) == sigmoid(max_d z_d).
    @pl.when(c == pl.num_programs(2) - 1)
    def _():
        o_ref[0] = jax.nn.sigmoid(o_ref[0])


# --------------------------- wrapper / tiling --------------------------------
def _block_diag_params(w0, b0, w1, b1, w2, b2, dpc):
    """Expand the folded per-voxel MLP weights to block-diagonal form so one
    matmul per layer processes `dpc` depth slices at once."""
    eye = jnp.eye(dpc, dtype=jnp.float32)
    G = w0.shape[1]
    # w0s[g, d*16 + o, d'] = w0[o, g] * (d == d')
    w0s = jnp.stack([jnp.kron(eye, w0[:, g:g + 1]) for g in range(G)])
    w1bd = jnp.kron(eye, w1)            # (dpc*8, dpc*16)
    w2bd = jnp.kron(eye, w2)            # (dpc,   dpc*8)
    b0bd = jnp.tile(b0, (dpc, 1))       # (dpc*16, 1)
    b1bd = jnp.tile(b1, (dpc, 1))       # (dpc*8,  1)
    b2bd = jnp.tile(b2, (dpc, 1))       # (dpc,    1)
    return (w0s.astype(jnp.bfloat16), b0bd,
            w1bd.astype(jnp.bfloat16), b1bd,
            w2bd.astype(jnp.bfloat16), b2bd)


def pixelwise_net(x, w0, b0, w1, b1, w2, b2, *,
                  max_lane_tile=2048,    # HW lane-tile cap (multiple of 128)
                  max_depth_chunk=32):   # depth slices per grid step (mult. of 8)
    """x: [B, G, D, H, W] float32 (PyTorch NCDHW). Returns [B, 1, H, W] float32."""
    B, G, D, H, W = x.shape
    HW = H * W

    # ----- lane (H*W) tiling: lane-dense stores, >= 2 "parallel" grid blocks --
    lanes = pl.cdiv(HW, 128)                         # HW in units of 128 lanes
    n_hw = pl.cdiv(lanes, max(1, max_lane_tile // 128))
    if B * n_hw < 2 and lanes >= 2:
        n_hw = 2                                     # keep both v7x TCs fed
    hw_tile = pl.cdiv(lanes, n_hw) * 128
    HWp = n_hw * hw_tile

    # ----- depth chunking: dpc == D (full dim) or a multiple of 8 ------------
    if D <= max_depth_chunk:
        dpc = D
    else:
        dpc = (max_depth_chunk // 8) * 8
    n_dc = pl.cdiv(D, dpc)
    needs_mask = (D % dpc) != 0                      # ragged tail chunk

    # Native-layout ingest: [B,G,D,H,W] -> [B,G,D,H*W] is a free reshape; only
    # pad the flattened HW axis if it is not a whole number of lane tiles.
    xk = x.reshape(B, G, D, HW)
    if HWp != HW:
        xk = jnp.pad(xk, ((0, 0), (0, 0), (0, 0), (0, HWp - HW)))

    w0s, b0bd, w1bd, b1bd, w2bd, b2bd = _block_diag_params(
        w0, b0, w1, b1, w2, b2, dpc)

    grid = (B, n_hw, n_dc)   # depth-chunk axis last (resident output reduction)

    # ----- VMEM budget: double-buffered inputs + f32/bf16 temporaries, capped
    # at 32 MiB so it is also safe on v7x (64 MiB VMEM / 32 MiB scoped default).
    x_rows = G * (pl.cdiv(dpc, 8) * 8)
    x_block = x_rows * hw_tile * 4
    interm = ((dpc * 16 + dpc * 8 + max(dpc, 8)) * hw_tile * 4
              + (dpc * 16 + dpc * 8) * hw_tile * 2)
    w_bytes = (G * dpc * 16 * max(dpc, 128)
               + dpc * 8 * dpc * 16
               + max(dpc, 16) * max(dpc * 8, 128)) * 2
    b_bytes = (dpc * 16 + dpc * 8 + max(dpc, 8)) * 128 * 4
    out_block = 8 * hw_tile * 4
    vmem_limit = 2 * (x_block + w_bytes + b_bytes + out_block) + interm + (6 << 20)
    vmem_limit = int(min(max(vmem_limit, 16 << 20), 32 << 20))

    kernel = functools.partial(pixelwise_kernel, G=G, dpc=dpc, D=D,
                               needs_mask=needs_mask)

    out = pl.pallas_call(
        kernel,
        out_shape=jax.ShapeDtypeStruct((B, 1, HWp), jnp.float32),
        grid_spec=pltpu.PrefetchScalarGridSpec(
            num_scalar_prefetch=0,
            grid=grid,
            in_specs=[
                pl.BlockSpec((1, G, dpc, hw_tile), lambda b, h, c: (b, 0, c, h)),
                pl.BlockSpec((G, dpc * 16, dpc), lambda b, h, c: (0, 0, 0)),
                pl.BlockSpec((dpc * 16, 1), lambda b, h, c: (0, 0)),
                pl.BlockSpec((dpc * 8, dpc * 16), lambda b, h, c: (0, 0)),
                pl.BlockSpec((dpc * 8, 1), lambda b, h, c: (0, 0)),
                pl.BlockSpec((dpc, dpc * 8), lambda b, h, c: (0, 0)),
                pl.BlockSpec((dpc, 1), lambda b, h, c: (0, 0)),
            ],
            out_specs=pl.BlockSpec((1, 1, hw_tile), lambda b, h, c: (b, 0, h)),
        ),
        compiler_params=pltpu.CompilerParams(
            dimension_semantics=("parallel", "parallel", "arbitrary"),
            vmem_limit_bytes=vmem_limit),
    )(xk, w0s, b0bd, w1bd, b1bd, w2bd, b2bd)

    return out[:, :, :HW].reshape(B, 1, H, W)


# ------------------------- parameter construction ---------------------------
def make_params(G, key):
    """Deterministic weights; BN folded (eval mode) into conv weight/bias."""
    ks = jax.random.split(key, 8)
    eps = 1e-5

    def fold_bn(w, gamma, beta, mean, var):
        scale = gamma / jnp.sqrt(var + eps)           # (Cout,)
        w_f = w * scale[:, None]                      # (Cout, Cin)
        b_f = beta - mean * scale                     # (Cout,)
        return w_f, b_f[:, None]                      # bias as (Cout, 1)

    # conv0: Conv3d(G, 16, 1, bias=False) + BN(16)
    w0 = jax.random.normal(ks[0], (16, G), jnp.float32) * 0.5
    g0 = 1.0 + 0.1 * jax.random.normal(ks[1], (16,), jnp.float32)
    be0 = 0.1 * jax.random.normal(ks[2], (16,), jnp.float32)
    m0 = 0.05 * jax.random.normal(ks[3], (16,), jnp.float32)
    v0 = jnp.abs(1.0 + 0.1 * jax.random.normal(ks[4], (16,), jnp.float32))
    w0f, b0f = fold_bn(w0, g0, be0, m0, v0)

    # conv1: Conv3d(16, 8, 1, bias=False) + BN(8)
    w1 = jax.random.normal(ks[5], (8, 16), jnp.float32) * 0.3
    g1 = jnp.ones((8,), jnp.float32)
    be1 = jnp.zeros((8,), jnp.float32)
    m1 = jnp.zeros((8,), jnp.float32)
    v1 = jnp.ones((8,), jnp.float32)
    w1f, b1f = fold_bn(w1, g1, be1, m1, v1)

    # conv2: Conv3d(8, 1, 1, bias=True)
    w2 = jax.random.normal(ks[6], (1, 8), jnp.float32) * 0.3
    b2 = 0.1 * jax.random.normal(ks[7], (1,), jnp.float32)
    b2 = b2[:, None]                                   # (1, 1)

    return w0f, b0f, w1f, b1f, w2, b2


# ------------------------------ JAX reference --------------------------------
def reference_forward(x, w0, b0, w1, b1, w2, b2):
    """Pure f32 reference matching the original PyTorch module semantics."""
    hi = lax.Precision.HIGHEST
    h = jnp.einsum('og,bgdhw->bodhw', w0, x, precision=hi) \
        + b0[:, 0][None, :, None, None, None]
    h = jnp.maximum(h, 0.0)
    h = jnp.einsum('oc,bcdhw->bodhw', w1, h, precision=hi) \
        + b1[:, 0][None, :, None, None, None]
    h = jnp.maximum(h, 0.0)
    h = jnp.einsum('oc,bcdhw->bodhw', w2, h, precision=hi) \
        + b2[:, 0][None, :, None, None, None]
    s = jax.nn.sigmoid(h[:, 0])                 # squeeze(1) -> [B, D, H, W]
    return jnp.max(s, axis=1, keepdims=True)    # [B, 1, H, W]


# ---------------------------------- main -------------------------------------
if __name__ == "__main__":
    key = jax.random.PRNGKey(0)
    k_x, k_p = jax.random.split(key)

    B, G, D, H, W = 2, 4, 8, 16, 16
    x = jax.random.normal(k_x, (B, G, D, H, W), jnp.float32)

    params = make_params(G, k_p)

    out = jax.block_until_ready(pixelwise_net(x, *params))
    ref = jax.block_until_ready(reference_forward(x, *params))

    assert out.shape == (B, 1, H, W), out.shape
    # Kernel matmuls use bf16 operands with f32 accumulation; compare against
    # the exact f32 reference with a correspondingly relaxed tolerance.
    np.testing.assert_allclose(np.asarray(out), np.asarray(ref),
                               rtol=2e-2, atol=2e-2)
    print("KERNEL_OK")
</pallas_src>

<mosaic_0001>
module attributes {stable_mosaic.version = 11 : i64} {
  func.func @pixelwise_kernel(%arg0: i32, %arg1: i32, %arg2: i32, %arg3: memref<1x4x8x256xf32, #tpu.memory_space<vmem>>, %arg4: memref<4x128x8xbf16, #tpu.memory_space<vmem>>, %arg5: memref<128x1xf32, #tpu.memory_space<vmem>>, %arg6: memref<64x128xbf16, #tpu.memory_space<vmem>>, %arg7: memref<64x1xf32, #tpu.memory_space<vmem>>, %arg8: memref<8x64xbf16, #tpu.memory_space<vmem>>, %arg9: memref<8x1xf32, #tpu.memory_space<vmem>>, %arg10: memref<1x1x256xf32, #tpu.memory_space<vmem>>) attributes {dimension_semantics = [#tpu.dimension_semantics<parallel>, #tpu.dimension_semantics<parallel>, #tpu.dimension_semantics<arbitrary>], iteration_bounds = array<i64: 2, 1, 1>, scalar_prefetch = 0 : i64, scratch_operands = 0 : i64, tpu.core_type = #tpu.core_type<tc>, window_params = [{transform_indices = @transform_0, window_bounds = array<i64: 1, 4, 8, 256>}, {pipeline_mode = #tpu.pipeline_mode<synchronous>, transform_indices = @transform_1, window_bounds = array<i64: 4, 128, 8>}, {pipeline_mode = #tpu.pipeline_mode<synchronous>, transform_indices = @transform_2, window_bounds = array<i64: 128, 1>}, {pipeline_mode = #tpu.pipeline_mode<synchronous>, transform_indices = @transform_3, window_bounds = array<i64: 64, 128>}, {pipeline_mode = #tpu.pipeline_mode<synchronous>, transform_indices = @transform_4, window_bounds = array<i64: 64, 1>}, {pipeline_mode = #tpu.pipeline_mode<synchronous>, transform_indices = @transform_5, window_bounds = array<i64: 8, 64>}, {pipeline_mode = #tpu.pipeline_mode<synchronous>, transform_indices = @transform_6, window_bounds = array<i64: 8, 1>}, {transform_indices = @transform_7, window_bounds = array<i64: 1, 1, 256>}]} {
    %c0 = arith.constant 0 : index
    %c0_0 = arith.constant 0 : index
    %c0_1 = arith.constant 0 : index
    %0 = vector.load %arg4[%c0, %c0_0, %c0_1] : memref<4x128x8xbf16, #tpu.memory_space<vmem>>, vector<1x128x8xbf16>
    %1 = vector.shape_cast %0 : vector<1x128x8xbf16> to vector<128x8xbf16>
    %c0_2 = arith.constant 0 : index
    %c0_3 = arith.constant 0 : index
    %c0_4 = arith.constant 0 : index
    %c0_5 = arith.constant 0 : index
    %2 = vector.load %arg3[%c0_2, %c0_3, %c0_4, %c0_5] : memref<1x4x8x256xf32, #tpu.memory_space<vmem>>, vector<1x1x8x256xf32>
    %3 = vector.shape_cast %2 : vector<1x1x8x256xf32> to vector<8x256xf32>
    %4 = arith.truncf %3 : vector<8x256xf32> to vector<8x256xbf16>
    %cst = arith.constant dense<0.000000e+00> : vector<128x256xf32>
    %5 = tpu.matmul %1, %4, %cst {dimension_numbers = #tpu.dot_dimension_numbers<[1], [0], [0], [1], [0, 0, 1, 1], [], []>} : vector<128x8xbf16>, vector<8x256xbf16>, vector<128x256xf32> -> vector<128x256xf32>
    %c1 = arith.constant 1 : index
    %c0_6 = arith.constant 0 : index
    %c0_7 = arith.constant 0 : index
    %6 = vector.load %arg4[%c1, %c0_6, %c0_7] : memref<4x128x8xbf16, #tpu.memory_space<vmem>>, vector<1x128x8xbf16>
    %7 = vector.shape_cast %6 : vector<1x128x8xbf16> to vector<128x8xbf16>
    %c0_8 = arith.constant 0 : index
    %c1_9 = arith.constant 1 : index
    %c0_10 = arith.constant 0 : index
    %c0_11 = arith.constant 0 : index
    %8 = vector.load %arg3[%c0_8, %c1_9, %c0_10, %c0_11] : memref<1x4x8x256xf32, #tpu.memory_space<vmem>>, vector<1x1x8x256xf32>
    %9 = vector.shape_cast %8 : vector<1x1x8x256xf32> to vector<8x256xf32>
    %10 = arith.truncf %9 : vector<8x256xf32> to vector<8x256xbf16>
    %cst_12 = arith.constant dense<0.000000e+00> : vector<128x256xf32>
    %11 = tpu.matmul %7, %10, %cst_12 {dimension_numbers = #tpu.dot_dimension_numbers<[1], [0], [0], [1], [0, 0, 1, 1], [], []>} : vector<128x8xbf16>, vector<8x256xbf16>, vector<128x256xf32> -> vector<128x256xf32>
    %12 = arith.addf %5, %11 : vector<128x256xf32>
    %c2 = arith.constant 2 : index
    %c0_13 = arith.constant 0 : index
    %c0_14 = arith.constant 0 : index
    %13 = vector.load %arg4[%c2, %c0_13, %c0_14] : memref<4x128x8xbf16, #tpu.memory_space<vmem>>, vector<1x128x8xbf16>
    %14 = vector.shape_cast %13 : vector<1x128x8xbf16> to vector<128x8xbf16>
    %c0_15 = arith.constant 0 : index
    %c2_16 = arith.constant 2 : index
    %c0_17 = arith.constant 0 : index
    %c0_18 = arith.constant 0 : index
    %15 = vector.load %arg3[%c0_15, %c2_16, %c0_17, %c0_18] : memref<1x4x8x256xf32, #tpu.memory_space<vmem>>, vector<1x1x8x256xf32>
    %16 = vector.shape_cast %15 : vector<1x1x8x256xf32> to vector<8x256xf32>
    %17 = arith.truncf %16 : vector<8x256xf32> to vector<8x256xbf16>
    %cst_19 = arith.constant dense<0.000000e+00> : vector<128x256xf32>
    %18 = tpu.matmul %14, %17, %cst_19 {dimension_numbers = #tpu.dot_dimension_numbers<[1], [0], [0], [1], [0, 0, 1, 1], [], []>} : vector<128x8xbf16>, vector<8x256xbf16>, vector<128x256xf32> -> vector<128x256xf32>
    %19 = arith.addf %12, %18 : vector<128x256xf32>
    %c3 = arith.constant 3 : index
    %c0_20 = arith.constant 0 : index
    %c0_21 = arith.constant 0 : index
    %20 = vector.load %arg4[%c3, %c0_20, %c0_21] : memref<4x128x8xbf16, #tpu.memory_space<vmem>>, vector<1x128x8xbf16>
    %21 = vector.shape_cast %20 : vector<1x128x8xbf16> to vector<128x8xbf16>
    %c0_22 = arith.constant 0 : index
    %c3_23 = arith.constant 3 : index
    %c0_24 = arith.constant 0 : index
    %c0_25 = arith.constant 0 : index
    %22 = vector.load %arg3[%c0_22, %c3_23, %c0_24, %c0_25] : memref<1x4x8x256xf32, #tpu.memory_space<vmem>>, vector<1x1x8x256xf32>
    %23 = vector.shape_cast %22 : vector<1x1x8x256xf32> to vector<8x256xf32>
    %24 = arith.truncf %23 : vector<8x256xf32> to vector<8x256xbf16>
    %cst_26 = arith.constant dense<0.000000e+00> : vector<128x256xf32>
    %25 = tpu.matmul %21, %24, %cst_26 {dimension_numbers = #tpu.dot_dimension_numbers<[1], [0], [0], [1], [0, 0, 1, 1], [], []>} : vector<128x8xbf16>, vector<8x256xbf16>, vector<128x256xf32> -> vector<128x256xf32>
    %26 = arith.addf %19, %25 : vector<128x256xf32>
    %c0_27 = arith.constant 0 : index
    %c0_28 = arith.constant 0 : index
    %27 = vector.load %arg5[%c0_27, %c0_28] : memref<128x1xf32, #tpu.memory_space<vmem>>, vector<128x1xf32>
    %28 = vector.broadcast %27 : vector<128x1xf32> to vector<128x256xf32>
    %29 = arith.addf %26, %28 : vector<128x256xf32>
    %cst_29 = arith.constant 0.000000e+00 : f32
    %30 = vector.broadcast %cst_29 : f32 to vector<128x256xf32>
    %31 = arith.maximumf %29, %30 : vector<128x256xf32>
    %32 = arith.truncf %31 : vector<128x256xf32> to vector<128x256xbf16>
    %c0_30 = arith.constant 0 : index
    %c0_31 = arith.constant 0 : index
    %33 = vector.load %arg6[%c0_30, %c0_31] : memref<64x128xbf16, #tpu.memory_space<vmem>>, vector<64x128xbf16>
    %cst_32 = arith.constant dense<0.000000e+00> : vector<64x256xf32>
    %34 = tpu.matmul %33, %32, %cst_32 {dimension_numbers = #tpu.dot_dimension_numbers<[1], [0], [0], [1], [0, 0, 1, 1], [], []>} : vector<64x128xbf16>, vector<128x256xbf16>, vector<64x256xf32> -> vector<64x256xf32>
    %c0_33 = arith.constant 0 : index
    %c0_34 = arith.constant 0 : index
    %35 = vector.load %arg7[%c0_33, %c0_34] : memref<64x1xf32, #tpu.memory_space<vmem>>, vector<64x1xf32>
    %36 = vector.broadcast %35 : vector<64x1xf32> to vector<64x256xf32>
    %37 = arith.addf %34, %36 : vector<64x256xf32>
    %cst_35 = arith.constant 0.000000e+00 : f32
    %38 = vector.broadcast %cst_35 : f32 to vector<64x256xf32>
    %39 = arith.maximumf %37, %38 : vector<64x256xf32>
    %40 = arith.truncf %39 : vector<64x256xf32> to vector<64x256xbf16>
    %c0_36 = arith.constant 0 : index
    %c0_37 = arith.constant 0 : index
    %41 = vector.load %arg8[%c0_36, %c0_37] : memref<8x64xbf16, #tpu.memory_space<vmem>>, vector<8x64xbf16>
    %cst_38 = arith.constant dense<0.000000e+00> : vector<8x256xf32>
    %42 = tpu.matmul %41, %40, %cst_38 {dimension_numbers = #tpu.dot_dimension_numbers<[1], [0], [0], [1], [0, 0, 1, 1], [], []>} : vector<8x64xbf16>, vector<64x256xbf16>, vector<8x256xf32> -> vector<8x256xf32>
    %c0_39 = arith.constant 0 : index
    %c0_40 = arith.constant 0 : index
    %43 = vector.load %arg9[%c0_39, %c0_40] : memref<8x1xf32, #tpu.memory_space<vmem>>, vector<8x1xf32>
    %44 = vector.broadcast %43 : vector<8x1xf32> to vector<8x256xf32>
    %45 = arith.addf %42, %44 : vector<8x256xf32>
    %cst_41 = arith.constant dense<0xFF800000> : vector<256xf32>
    %46 = vector.multi_reduction <maximumf>, %45, %cst_41 [0] : vector<8x256xf32> to vector<256xf32>
    %47 = vector.shape_cast %46 : vector<256xf32> to vector<1x256xf32>
    %c0_i32 = arith.constant 0 : i32
    %48 = arith.cmpi eq, %arg2, %c0_i32 : i32
    %49 = arith.extui %48 : i1 to i32
    %c0_i32_42 = arith.constant 0 : i32
    %50 = arith.cmpi ne, %49, %c0_i32_42 : i32
    scf.if %50 {
      %c0_47 = arith.constant 0 : index
      %c0_48 = arith.constant 0 : index
      %c0_49 = arith.constant 0 : index
      %57 = vector.load %arg10[%c0_47, %c0_48, %c0_49] : memref<1x1x256xf32, #tpu.memory_space<vmem>>, vector<1x1x256xf32>
      %58 = vector.shape_cast %57 : vector<1x1x256xf32> to vector<1x256xf32>
      %59 = vector.shape_cast %47 : vector<1x256xf32> to vector<1x1x256xf32>
      tpu.vector_store %arg10[%c0_47, %c0_48, %c0_49], %59 {strides = array<i32>} : memref<1x1x256xf32, #tpu.memory_space<vmem>>, vector<1x1x256xf32>,
    } else {
    }
    %c0_i32_43 = arith.constant 0 : i32
    %51 = arith.cmpi sgt, %arg2, %c0_i32_43 : i32
    %52 = arith.extui %51 : i1 to i32
    %c0_i32_44 = arith.constant 0 : i32
    %53 = arith.cmpi ne, %52, %c0_i32_44 : i32
    scf.if %53 {
      %c0_47 = arith.constant 0 : index
      %c0_48 = arith.constant 0 : index
      %c0_49 = arith.constant 0 : index
      %57 = vector.load %arg10[%c0_47, %c0_48, %c0_49] : memref<1x1x256xf32, #tpu.memory_space<vmem>>, vector<1x1x256xf32>
      %58 = vector.shape_cast %57 : vector<1x1x256xf32> to vector<1x256xf32>
      %59 = arith.maximumf %58, %47 : vector<1x256xf32>
      %c0_50 = arith.constant 0 : index
      %c0_51 = arith.constant 0 : index
      %c0_52 = arith.constant 0 : index
      %60 = vector.load %arg10[%c0_50, %c0_51, %c0_52] : memref<1x1x256xf32, #tpu.memory_space<vmem>>, vector<1x1x256xf32>
      %61 = vector.shape_cast %60 : vector<1x1x256xf32> to vector<1x256xf32>
      %62 = vector.shape_cast %59 : vector<1x256xf32> to vector<1x1x256xf32>
      tpu.vector_store %arg10[%c0_50, %c0_51, %c0_52], %62 {strides = array<i32>} : memref<1x1x256xf32, #tpu.memory_space<vmem>>, vector<1x1x256xf32>,
    } else {
    }
    %c0_i32_45 = arith.constant 0 : i32
    %54 = arith.cmpi eq, %arg2, %c0_i32_45 : i32
    %55 = arith.extui %54 : i1 to i32
    %c0_i32_46 = arith.constant 0 : i32
    %56 = arith.cmpi ne, %55, %c0_i32_46 : i32
    scf.if %56 {
      %c0_47 = arith.constant 0 : index
      %c0_48 = arith.constant 0 : index
      %c0_49 = arith.constant 0 : index
      %57 = vector.load %arg10[%c0_47, %c0_48, %c0_49] : memref<1x1x256xf32, #tpu.memory_space<vmem>>, vector<1x1x256xf32>
      %58 = vector.shape_cast %57 : vector<1x1x256xf32> to vector<1x256xf32>
      %59 = arith.negf %58 : vector<1x256xf32>
      %60 = math.exp %59 : vector<1x256xf32>
      %cst_50 = arith.constant 1.000000e+00 : f32
      %61 = vector.broadcast %cst_50 : f32 to vector<1x256xf32>
      %62 = arith.addf %61, %60 : vector<1x256xf32>
      %63 = arith.divf %61, %62 : vector<1x256xf32>
      %c0_51 = arith.constant 0 : index
      %c0_52 = arith.constant 0 : index
      %c0_53 = arith.constant 0 : index
      %64 = vector.load %arg10[%c0_51, %c0_52, %c0_53] : memref<1x1x256xf32, #tpu.memory_space<vmem>>, vector<1x1x256xf32>
      %65 = vector.shape_cast %64 : vector<1x1x256xf32> to vector<1x256xf32>
      %66 = vector.shape_cast %63 : vector<1x256xf32> to vector<1x1x256xf32>
      tpu.vector_store %arg10[%c0_51, %c0_52, %c0_53], %66 {strides = array<i32>} : memref<1x1x256xf32, #tpu.memory_space<vmem>>, vector<1x1x256xf32>,
    } else {
    }
    return
  }
  func.func @transform_0(%arg0: i32, %arg1: i32, %arg2: i32) -> (i32, i32, i32, i32) {
    %c0_i32 = arith.constant 0 : i32
    %c0_i32_0 = arith.constant 0 : i32
    return %arg0, %c0_i32, %arg2, %arg1 : i32, i32, i32, i32
  }
  func.func @transform_1(%arg0: i32, %arg1: i32, %arg2: i32) -> (i32, i32, i32) {
    %c0_i32 = arith.constant 0 : i32
    %c0_i32_0 = arith.constant 0 : i32
    %c0_i32_1 = arith.constant 0 : i32
    %c0_i32_2 = arith.constant 0 : i32
    return %c0_i32, %c0_i32_0, %c0_i32_1 : i32, i32, i32
  }
  func.func @transform_2(%arg0: i32, %arg1: i32, %arg2: i32) -> (i32, i32) {
    %c0_i32 = arith.constant 0 : i32
    %c0_i32_0 = arith.constant 0 : i32
    %c0_i32_1 = arith.constant 0 : i32
    return %c0_i32, %c0_i32_0 : i32, i32
  }
  func.func @transform_3(%arg0: i32, %arg1: i32, %arg2: i32) -> (i32, i32) {
    %c0_i32 = arith.constant 0 : i32
    %c0_i32_0 = arith.constant 0 : i32
    %c0_i32_1 = arith.constant 0 : i32
    return %c0_i32, %c0_i32_0 : i32, i32
  }
  func.func @transform_4(%arg0: i32, %arg1: i32, %arg2: i32) -> (i32, i32) {
    %c0_i32 = arith.constant 0 : i32
    %c0_i32_0 = arith.constant 0 : i32
    %c0_i32_1 = arith.constant 0 : i32
    return %c0_i32, %c0_i32_0 : i32, i32
  }
  func.func @transform_5(%arg0: i32, %arg1: i32, %arg2: i32) -> (i32, i32) {
    %c0_i32 = arith.constant 0 : i32
    %c0_i32_0 = arith.constant 0 : i32
    %c0_i32_1 = arith.constant 0 : i32
    return %c0_i32, %c0_i32_0 : i32, i32
  }
  func.func @transform_6(%arg0: i32, %arg1: i32, %arg2: i32) -> (i32, i32) {
    %c0_i32 = arith.constant 0 : i32
    %c0_i32_0 = arith.constant 0 : i32
    %c0_i32_1 = arith.constant 0 : i32
    return %c0_i32, %c0_i32_0 : i32, i32
  }
  func.func @transform_7(%arg0: i32, %arg1: i32, %arg2: i32) -> (i32, i32, i32) {
    %c0_i32 = arith.constant 0 : i32
    %c0_i32_0 = arith.constant 0 : i32
    return %arg0, %c0_i32, %arg1 : i32, i32, i32
  }
}

</mosaic_0001>

<bundles_post_ra>
// kernel: tpu_custom_call.1
= control target key start
LH: loop header
LB: loop body
LE: loop exit
PB: predicated region body
PF: predicated region fallthrough
CT: control target
= control target key end

     0   :  { %12 = vsyncpa [#allocation3], 0  ;;  %s2727_s0 = inlined_call_operand.vmem [shape: f32[2,4,8,256], index: 0, kind: input, shape index: {}]   ;;  %s2728_s1 = inlined_call_operand.vmem [shape: bf16[4,128,8], index: 1, kind: input, shape index: {}]   ;;  %s2729_s2 = inlined_call_operand.vmem [shape: f32[128,1], index: 2, kind: input, shape index: {}]   ;;  %s2730_s3 = inlined_call_operand.vmem [shape: bf16[64,128], index: 3, kind: input, shape index: {}]   ;;  %s2731_s4 = inlined_call_operand.vmem [shape: f32[64,1], index: 4, kind: input, shape index: {}]   ;;  %s2732_s5 = inlined_call_operand.vmem [shape: bf16[8,64], index: 5, kind: input, shape index: {}]   ;;  %s2733_s6 = inlined_call_operand.vmem [shape: f32[8,1], index: 6, kind: input, shape index: {}]   ;;  %s2734_s7 = inlined_call_operand.hbm [shape: f32[2,1,256], index: 7, kind: output, shape index: {}]  }
   0x1   :  { %14 = vsyncpa [#allocation3 + $0x1], 0  ;;  %s2267_s24 = smov 0   ;;  %s2269_s25 = smov 0  }
   0x2   :  { %s2271_s26 = smov 0   ;;  %s2273_s27 = smov 0  }
   0x3   :  { %s2275_s28 = smov 0   ;;  %s2277_s29 = smov 0  }
   0x4 LB: > { %s1804_s30 = sadd.s32 4294967295, %s2222_s29   ;;  %s1805_s8 = sadd.s32 4294967294, %s2222_s29   ;;  %s2222_s29 = sphi %s2277_s29, %s20_s29   ;;  %s2218_s28 = sphi %s2275_s28, %s2741_s28   ;;  %s2214_s27 = sphi %s2273_s27, %s2740_s27   ;;  %s2210_s26 = sphi %s2271_s26, %s2739_s26   ;;  %s2206_s25 = sphi %s2269_s25, %s2738_s25   ;;  %s2202_s24 = sphi %s2267_s24, %s2737_s24  }
   0x5   : > { %s39_s9 = sadd.s32 1, %s2218_s28  ;;  %s204_s10 = sadd.s32 1, %s2210_s26 }
   0x6   : > { %p41_p0 = scmp.ge.s32.totalorder %s39_s9, 2  ;;  %p214_p1 = scmp.ne.s32.totalorder %s2210_s26, %s2206_s25 }
   0x7   : > { %p215_p2 = scmp.eq.s32.totalorder %s1804_s30, 1  ;;  %p220_p3 = scmp.ne.s32.totalorder %s2206_s25, %s2202_s24 }
   0x8   : > { %s2743_s9 = smov (%p41_p0, %s39_s9), 0  ;;  %p221_p5 = scmp.eq.s32.totalorder %s1805_s8, 1 }
   0x9   : > { %p2307_p4 = por %p215_p2, %p214_p1  ;;  %s199_s12 = ssub.s32 %s2218_s28, %s2743_s9 }
   0xa   : > { %p1808_p6 = scmp.ge.s32.totalorder %s2222_s29, 1  ;;  %p202_p7 = scmp.eq.s32.totalorder %s199_s12, 0 }
   0xb   : > { %p2314_p8 = por %p221_p5, %p220_p3  ;;  %p274_p9 = scmp.lt.s32.totalorder %s2222_s29, 3 }
   0xc   : > { %s2320_s14 = scalar_select %p202_p7, %s2210_s26, %s204_s10  }
   0xd   : > { %p275_p10 = pnand %p1808_p6, %p274_p9 }
   0xe   : > { %p315_p11 = scmp.lt.s32.totalorder (!%p275_p10), %s2214_s27, 1  ;;  %v2224_v0 = vmov (!%p275_p10), 0   ;;  %vm437_vm0 = vcmask (!%p275_p10), 1043456   ;;  %vm412_vm1 = vcmask (!%p275_p10), 64512   ;;  %v2104_v14 = vld [vmem:[%s2728_s1] sm:$0xff] (!%p275_p10)   ;;  %v2106_v20 = vld [vmem:[%s2728_s1 + $0x8] sm:$0xff] (!%p275_p10)  }
   0xf   : > { %278 = sbr.rel (%p275_p10) target bundleno = 934 (0x3a6), region = 48  ;;  %659 = vmatprep.mubr.bf16.mxu0 (!%p275_p10), %v2224_v0  ;;  %476 = vmatprep.mubr.bf16.mxu1 (!%p275_p10), %v2224_v0  ;;  %v2105_v17 = vld [vmem:[%s2728_s1 + $0x40] sm:$0xff] (!%p275_p10)   ;;  %v2107_v21 = vld [vmem:[%s2728_s1 + $0x48] sm:$0xff] (!%p275_p10)   ;;  %v2108_v22 = vld [vmem:[%s2728_s1 + $0x10] sm:$0xff] (!%p275_p10)   ;;  %vm1574_vm2 = vcmask (!%p275_p10), 523264   ;;  %s311_s12 = sand.u32 (!%p275_p10), 1, %s2206_s25  }
  0x10   : > { %2102 = vset.pattern.permute.xlu0 (!%p275_p10), %v2224_v0  ;;  %2103 = vset.pattern.permute.xlu1 (!%p275_p10), %v2224_v0  ;;  %v2109_v23 = vld [vmem:[%s2728_s1 + $0x50] sm:$0xff] (!%p275_p10)   ;;  %v2110_v26 = vld [vmem:[%s2728_s1 + $0x80] sm:$0xff] (!%p275_p10)   ;;  %v2111_v27 = vld [vmem:[%s2728_s1 + $0x58] sm:$0xff] (!%p275_p10)   ;;  %s1946_s17 = sshll.u32 (!%p275_p10), %s2214_s27, 5  ;;  %s1703_s23 = scalar_lea.sflag (!%p275_p10), [#allocation3], %s311_s12 }
  0x11   : > { %v1214_v29 = vld [vmem:[%s2729_s2] sm:$0xff] (!%p275_p10)  ;;  %v1216_v30 = vld [vmem:[%s2729_s2 + $0x10] sm:$0xff] (!%p275_p10)  ;;  %v1215_v31 = vld [vmem:[%s2729_s2 + $0x8] sm:$0xff] (!%p275_p10)  ;;  %s2680_s22 = scalar_lea.hbm (!%p275_p10), %s2734_s7, %s1946_s17 }
  0x12   : > { %1232 = vperm.xlu0 (!%p275_p10), %2102, %v1214_v29   ;;  %1242 = vperm.xlu1 (!%p275_p10), %2103, %v1216_v30   ;;  %v1217_v32 = vld [vmem:[%s2729_s2 + $0x18] sm:$0xff] (!%p275_p10)  ;;  %v2112_v33 = vld [vmem:[%s2728_s1 + $0x88] sm:$0xff] (!%p275_p10)   ;;  %v1218_v34 = vld [vmem:[%s2729_s2 + $0x20] sm:$0xff] (!%p275_p10) }
  0x13   : > { %v2113_v35 = vld [vmem:[%s2728_s1 + $0x60] sm:$0xff] (!%p275_p10)   ;;  %v1219_v36 = vld [vmem:[%s2729_s2 + $0x28] sm:$0xff] (!%p275_p10)  ;;  %v1220_v37 = vld [vmem:[%s2729_s2 + $0x30] sm:$0xff] (!%p275_p10) }
  0x14   : > { %v1221_v38 = vld [vmem:[%s2729_s2 + $0x38] sm:$0xff] (!%p275_p10)  ;;  %v2114_v39 = vld [vmem:[%s2728_s1 + $0x90] sm:$0xff] (!%p275_p10)   ;;  %v1222_v40 = vld [vmem:[%s2729_s2 + $0x40] sm:$0xff] (!%p275_p10) }
  0x15   : > { %v2115_v41 = vld [vmem:[%s2728_s1 + $0x68] sm:$0xff] (!%p275_p10)   ;;  %v1224_v43 = vld [vmem:[%s2729_s2 + $0x50] sm:$0xff] (!%p275_p10)  ;;  %v1225_v44 = vld [vmem:[%s2729_s2 + $0x58] sm:$0xff] (!%p275_p10) }
  0x16   : > { %s316_s15 = scalar_select %p315_p11, %s2214_s27, 1  ;;  %1237 = vperm.xlu0 %2102, %v1215_v31   ;;  %1247 = vperm.xlu1 %2103, %v1217_v32   ;;  %v1223_v42 = vld [vmem:[%s2729_s2 + $0x48] sm:$0xff]  ;;  %v2116_v45 = vld [vmem:[%s2728_s1 + $0x98] sm:$0xff]   ;;  %v1226_v46 = vld [vmem:[%s2729_s2 + $0x60] sm:$0xff] }
  0x17   : > { %v2117_v47 = vld [vmem:[%s2728_s1 + $0x70] sm:$0xff]   ;;  %v1227_v48 = vld [vmem:[%s2729_s2 + $0x68] sm:$0xff]  ;;  %v1229_v50 = vld [vmem:[%s2729_s2 + $0x78] sm:$0xff]  ;;  %s2226_s27 = smov [#allocation2]  }
  0x18   : > { %s1945_s16 = sshll.u32 %s316_s15, 6  ;;  %v1228_v49 = vld [vmem:[%s2729_s2 + $0x70] sm:$0xff]  ;;  %v2118_v51 = vld [vmem:[%s2728_s1 + $0xa0] sm:$0xff]   ;;  %v2119_v53 = vld [vmem:[%s2728_s1 + $0x78] sm:$0xff]   ;;  %s1809_s15 = sshll.u32 %s311_s12, 1 }
  0x19   : > { %s2331_s19 = scalar_lea.vmem %s2727_s0, %s1945_s16  ;;  %v1398_v52 = vld [vmem:[%s2731_s4] sm:$0xff]  ;;  %v1399_v54 = vld [vmem:[%s2731_s4 + $0x8] sm:$0xff]  ;;  %v1400_v55 = vld [vmem:[%s2731_s4 + $0x10] sm:$0xff]  ;;  %s313_s16 = scalar_lea.vmem [#allocation2], %s1809_s15 }
  0x1a   : > { %v347_v1 = vld [vmem:[%s2331_s19 + $0x8] sm:$0xff]  ;;  %v346_v2 = vld [vmem:[%s2331_s19] sm:$0xff]  ;;  %v1829_v3 = vld [vmem:[%s2331_s19 + $0x18] sm:$0xff]  ;;  %1252 = vperm.xlu0 %2102, %v1218_v34   ;;  %1257 = vperm.xlu1 %2103, %v1219_v36   ;;  %s1719_s18 = sshll.u32 %s313_s16, 4  ;;  %s2148_s30 = sshll.u32 %s2226_s27, 4  ;;  %s2682_s18 = int_to_ptr.vmem [resolvable:$true] %s1719_s18  ;;  %s2149_s30 = int_to_ptr.vmem [resolvable:$false] %s2148_s30 }
  0x1b   : > { %v349_v4 = vpack.c.bf16 %v347_v1, %v347_v1  ;;  %v348_v5 = vpack.c.bf16 %v346_v2, %v346_v2  ;;  %v371_v6 = vpack.c.bf16 %v1829_v3, %v1829_v3  ;;  %v1828_v7 = vld [vmem:[%s2331_s19 + $0x10] sm:$0xff]  ;;  %v1881_v8 = vld [vmem:[%s2331_s19 + $0x28] sm:$0xff]  ;;  %v1880_v9 = vld [vmem:[%s2331_s19 + $0x20] sm:$0xff]  ;;  %s2150_s8 = scalar_lea.vmem %s2149_s30, 64  ;;  %p2151_p1 = scmp.lt.s32.totalorder %s2682_s18, %s2149_s30 }
  0x1c   : > { %v370_v10 = vpack.c.bf16 %v1828_v7, %v1828_v7  ;;  %v761_v11 = vpack.c.bf16 %v1881_v8, %v1881_v8  ;;  %v760_v12 = vpack.c.bf16 %v1880_v9, %v1880_v9  ;;  %v1916_v15 = vld [vmem:[%s2331_s19 + $0x38] sm:$0xff]  ;;  %v1915_v24 = vld [vmem:[%s2331_s19 + $0x30] sm:$0xff]  ;;  %v2120_v57 = vld [vmem:[%s2728_s1 + $0xa8] sm:$0xff]   ;;  %s2144_s19 = scalar_lea.vmem %s2682_s18, 32 }
  0x1d   : > { %1855 = vmatprep.subr.msk.bf16.mxu0 %vm437_vm0, %v349_v4  ;;  %v622_v13 = vsel %vm437_vm0, %v348_v5, 0  ;;  %1838 = vmatprep.subr.msk.bf16.mxu1 %vm437_vm0, %v371_v6  ;;  %v998_v19 = vpack.c.bf16 %v1916_v15, %v1916_v15  ;;  %v997_v25 = vpack.c.bf16 %v1915_v24, %v1915_v24  ;;  %v1401_v56 = vld [vmem:[%s2731_s4 + $0x18] sm:$0xff]  ;;  %v1402_v58 = vld [vmem:[%s2731_s4 + $0x20] sm:$0xff]  ;;  %v1403_v60 = vld [vmem:[%s2731_s4 + $0x28] sm:$0xff]  ;;  %p2145_p12 = scmp.ne.s32.totalorder %s2682_s18, %s2144_s19  ;;  %p2152_p2 = scmp.lt.s32.totalorder %s2150_s8, %s2144_s19 }
  0x1e   : > { %628 = vmatpush1.bf16.msra.mxu0 %v622_v13  ;;  %v439_v16 = vsel %vm437_vm0, %v370_v10, 0  ;;  %v827_v18 = vsel %vm437_vm0, %v760_v12, 0  ;;  %1262 = vperm.xlu0 %2102, %v1220_v37   ;;  %v2121_v59 = vld [vmem:[%s2728_s1 + $0x18] sm:$0xff]   ;;  %v1404_v61 = vld [vmem:[%s2731_s4 + $0x30] sm:$0xff]  ;;  %v1568_v1 = vld [vmem:[%s2733_s6] sm:$0xff] }
  0x1f   : > { %445 = vmatpush1.bf16.msra.mxu1 %v439_v16  ;;  %1890 = vmatprep.subr.msk.bf16.mxu0 %vm437_vm0, %v761_v11  ;;  %v1064_v28 = vsel %vm437_vm0, %v997_v25, 0  ;;  %v1405_v62 = vld [vmem:[%s2731_s4 + $0x38] sm:$0xff]  ;;  %v2122_v63 = vld [vmem:[%s2728_s1 + $0xb0] sm:$0xff]   ;;  %v2123_v2 = vld [vmem:[%s2728_s1 + $0x20] sm:$0xff]   ;;  %p2146_p13 = pnand %p2145_p12, %p2307_p4  ;;  %p2153_p3 = por %p2152_p2, %p2151_p1 }
  0x20   : > { %1947 = vmatprep.subr.msk.bf16.mxu1 %vm437_vm0, %v349_v4  ;;  %1267 = vperm.xlu1 %2103, %v1221_v38   ;;  %v2124_v3 = vld [vmem:[%s2728_s1 + $0xb8] sm:$0xff]   ;;  %v2125_v4 = vld [vmem:[%s2728_s1 + $0x28] sm:$0xff]   ;;  %v2126_v5 = vld [vmem:[%s2728_s1 + $0xc0] sm:$0xff]  }
  0x21   : > { %1856 = vmatmul.mubr.msk.bf16.vlgmr.msra.gmra.mrb[0].mxu0 %vm412_vm1, %v2104_v14  ;;  %v2127_v6 = vld [vmem:[%s2728_s1 + $0x30] sm:$0xff]   ;;  %v2128_v7 = vld [vmem:[%s2728_s1 + $0xc8] sm:$0xff]   ;;  %v2129_v8 = vld [vmem:[%s2728_s1 + $0x38] sm:$0xff]   ;;  %p2147_p0 = pneg %p2146_p13 }
  0x22   : > { %1839 = vmatmul.mubr.msk.bf16.vlgmr.msra.gmra.mrb[0].mxu1 %vm412_vm1, %v2105_v17  ;;  %833 = vmatpush1.bf16.msra.mxu0 %v827_v18  ;;  %v2130_v9 = vld [vmem:[%s2728_s1 + $0xd0] sm:$0xff]   ;;  %v2131_v10 = vld [vmem:[%s2728_s1 + $0xd8] sm:$0xff]   ;;  %v2132_v11 = vld [vmem:[%s2728_s1 + $0xe0] sm:$0xff]  }
  0x23   : > { %669 = vmatprep.mubr.bf16.mxu0 %v2224_v0  ;;  %486 = vmatprep.mubr.bf16.mxu1 %v2224_v0  ;;  %v2133_v12 = vld [vmem:[%s2728_s1 + $0xe8] sm:$0xff]   ;;  %v2135_v14 = vld [vmem:[%s2728_s1 + $0xf8] sm:$0xff]   ;;  %p2154_p5 = pnand %p2153_p3, %p2147_p0 }
  0x24   : > { %1925 = vmatprep.subr.msk.bf16.mxu0 %vm437_vm0, %v998_v19  ;;  %1948 = vmatpush1.bf16.msra.mxu1 %v622_v13  ;;  %v2134_v13 = vld [vmem:[%s2728_s1 + $0xf0] sm:$0xff]  }
  0x25   : > { %1272 = vperm.xlu0 %2102, %v1222_v40   ;;  %1277 = vperm.xlu1 %2103, %v1223_v42  }
  0x29   : > { %1857 = vmatmul.mubr.msk.bf16.gmra.mrb[4].mxu0 %vm412_vm1, %v2106_v20  ;;  %1282 = vperm.xlu0 %2102, %v1224_v43  }
  0x2a   : > { %1840 = vmatmul.mubr.msk.bf16.gmra.mrb[4].mxu1 %vm412_vm1, %v2107_v21  ;;  %679 = vmatprep.mubr.bf16.mxu0 %v2224_v0 }
  0x2b   : > { %496 = vmatprep.mubr.bf16.mxu1 %v2224_v0  ;;  %1287 = vperm.xlu1 %2103, %v1225_v44  }
  0x2d   : > { %1292 = vperm.xlu0 %2102, %v1226_v46  }
  0x2f   : > { %1297 = vperm.xlu1 %2103, %v1227_v48  }
  0x31   : > { %1858 = vmatmul.mubr.msk.bf16.gmra.mrb[8].mxu0 %vm412_vm1, %v2108_v22  ;;  %1302 = vperm.xlu0 %2102, %v1228_v49  }
  0x32   : > { %1841 = vmatmul.mubr.msk.bf16.gmra.mrb[8].mxu1 %vm412_vm1, %v2109_v23  ;;  %864 = vmatprep.mubr.bf16.mxu0 %v2224_v0 }
  0x33   : > { %506 = vmatprep.mubr.bf16.mxu1 %v2224_v0  ;;  %1307 = vperm.xlu1 %2103, %v1229_v50  }
  0x35   : > { %1408 = vperm.xlu0 %2102, %v1398_v52  }
  0x37   : > { %1413 = vperm.xlu1 %2103, %v1399_v54  }
  0x39   : > { %1891 = vmatmul.mubr.msk.bf16.vlgmr.msra.gmra.mrb[0].mxu0 %vm412_vm1, %v2110_v26  ;;  %1418 = vperm.xlu0 %2102, %v1400_v55  }
  0x3a   : > { %1842 = vmatmul.mubr.msk.bf16.gmra.mrb[12].mxu1 %vm412_vm1, %v2111_v27  ;;  %1070 = vmatpush1.bf16.msra.mxu0 %v1064_v28 }
  0x3b   : > { %874 = vmatprep.mubr.bf16.mxu0 %v2224_v0  ;;  %516 = vmatprep.mubr.bf16.mxu1 %v2224_v0 }
  0x3c   : > { %1423 = vperm.xlu1 %2103, %v1401_v56  }
  0x3d   : > { %1428 = vperm.xlu0 %2102, %v1402_v58  }
  0x40   : > { %1433 = vperm.xlu1 %2103, %v1403_v60  }
  0x41   : > { %1892 = vmatmul.mubr.msk.bf16.gmra.mrb[4].mxu0 %vm412_vm1, %v2112_v33  ;;  %1438 = vperm.xlu0 %2102, %v1404_v61  }
  0x42   : > { %1843 = vmatmul.mubr.msk.bf16.gmra.mrb[16].mxu1 %vm412_vm1, %v2113_v35  ;;  %884 = vmatprep.mubr.bf16.mxu0 %v2224_v0 }
  0x43   : > { %526 = vmatprep.mubr.bf16.mxu1 %v2224_v0 }
  0x44   : > { %1443 = vperm.xlu1 %2103, %v1405_v62  }
  0x45   : > { %1571 = vperm.xlu0 %2102, %v1568_v1  }
  0x49   : > { %1893 = vmatmul.mubr.msk.bf16.gmra.mrb[8].mxu0 %vm412_vm1, %v2114_v39 }
  0x4a   : > { %1844 = vmatmul.mubr.msk.bf16.gmra.mrb[20].mxu1 %vm412_vm1, %v2115_v41  ;;  %894 = vmatprep.mubr.bf16.mxu0 %v2224_v0 }
  0x4b   : > { %536 = vmatprep.mubr.bf16.mxu1 %v2224_v0 }
  0x51   : > { %1894 = vmatmul.mubr.msk.bf16.gmra.mrb[12].mxu0 %vm412_vm1, %v2116_v45 }
  0x52   : > { %1845 = vmatmul.mubr.msk.bf16.gmra.mrb[24].mxu1 %vm412_vm1, %v2117_v47  ;;  %904 = vmatprep.mubr.bf16.mxu0 %v2224_v0 }
  0x53   : > { %546 = vmatprep.mubr.bf16.mxu1 %v2224_v0 }
  0x59   : > { %1895 = vmatmul.mubr.msk.bf16.gmra.mrb[16].mxu0 %vm412_vm1, %v2118_v51 }
  0x5a   : > { %1846 = vmatmul.mubr.msk.bf16.gmra.mrb[28].mxu1 %vm412_vm1, %v2119_v53  ;;  %914 = vmatprep.mubr.bf16.mxu0 %v2224_v0 }
  0x5b   : > { %689 = vmatprep.mubr.bf16.mxu1 %v2224_v0 }
  0x61   : > { %1896 = vmatmul.mubr.msk.bf16.gmra.mrb[20].mxu0 %vm412_vm1, %v2120_v57 }
  0x62   : > { %1859 = vmatmul.mubr.msk.bf16.vlgmr.msra.gmra.mrb[12].mxu1 %vm412_vm1, %v2121_v59  ;;  %924 = vmatprep.mubr.bf16.mxu0 %v2224_v0 }
  0x63   : > { %699 = vmatprep.mubr.bf16.mxu1 %v2224_v0 }
  0x69   : > { %1897 = vmatmul.mubr.msk.bf16.gmra.mrb[24].mxu0 %vm412_vm1, %v2122_v63 }
  0x6a   : > { %1860 = vmatmul.mubr.msk.bf16.gmra.mrb[16].mxu1 %vm412_vm1, %v2123_v2  ;;  %934 = vmatprep.mubr.bf16.mxu0 %v2224_v0 }
  0x6b   : > { %709 = vmatprep.mubr.bf16.mxu1 %v2224_v0 }
  0x71   : > { %1898 = vmatmul.mubr.msk.bf16.gmra.mrb[28].mxu0 %vm412_vm1, %v2124_v3 }
  0x72   : > { %1861 = vmatmul.mubr.msk.bf16.gmra.mrb[20].mxu1 %vm412_vm1, %v2125_v4  ;;  %1101 = vmatprep.mubr.bf16.mxu0 %v2224_v0 }
  0x73   : > { %719 = vmatprep.mubr.bf16.mxu1 %v2224_v0 }
  0x79   : > { %1926 = vmatmul.mubr.msk.bf16.vlgmr.msra.gmra.mrb[0].mxu0 %vm412_vm1, %v2126_v5 }
  0x7a   : > { %1862 = vmatmul.mubr.msk.bf16.gmra.mrb[24].mxu1 %vm412_vm1, %v2127_v6  ;;  %1111 = vmatprep.mubr.bf16.mxu0 %v2224_v0 }
  0x7b   : > { %729 = vmatprep.mubr.bf16.mxu1 %v2224_v0 }
  0x81   : > { %1927 = vmatmul.mubr.msk.bf16.gmra.mrb[4].mxu0 %vm412_vm1, %v2128_v7 }
  0x82   : > { %1863 = vmatmul.mubr.msk.bf16.gmra.mrb[28].mxu1 %vm412_vm1, %v2129_v8  ;;  %1121 = vmatprep.mubr.bf16.mxu0 %v2224_v0 }
  0x83   : > { %1502 = vmatprep.mubr.bf16.mxu1 %v2224_v0 }
  0x89   : > { %1928 = vmatmul.mubr.msk.bf16.gmra.mrb[8].mxu0 %vm412_vm1, %v2130_v9 }
  0x8a   : > { %1131 = vmatprep.mubr.bf16.mxu0 %v2224_v0 }
  0x91   : > { %1929 = vmatmul.mubr.msk.bf16.gmra.mrb[12].mxu0 %vm412_vm1, %v2131_v10  ;;  %v1233_v39 = vpop.permute.xlu0 %1232  ;;  %v1243_v56 = vpop.permute.xlu1 %1242 }
  0x92   : > { %1141 = vmatprep.mubr.bf16.mxu0 %v2224_v0 }
  0x95   : > { %v1238_v51 = vpop.permute.xlu0 %1237 }
  0x99   : > { %1930 = vmatmul.mubr.msk.bf16.gmra.mrb[16].mxu0 %vm412_vm1, %v2132_v11 }
  0x9a   : > { %1151 = vmatprep.mubr.bf16.mxu0 %v2224_v0 }
  0xa1   : > { %1931 = vmatmul.mubr.msk.bf16.gmra.mrb[20].mxu0 %vm412_vm1, %v2133_v12  ;;  %v1248_v12 = vpop.permute.xlu1 %1247 }
  0xa2   : > { %1161 = vmatprep.mubr.bf16.mxu0 %v2224_v0 }
  0xa9   : > { %1932 = vmatmul.mubr.msk.bf16.gmra.mrb[24].mxu0 %vm412_vm1, %v2134_v13 }
  0xaa   : > { %1171 = vmatprep.mubr.bf16.mxu0 %v2224_v0 }
  0xb1   : > { %1933 = vmatmul.mubr.msk.bf16.gmra.mrb[28].mxu0 %vm412_vm1, %v2135_v14 }
  0xf5   : > { %v478_v15 = vpop.f32.mrb[0].mxu1 }
  0xf6   : > { %v480_v16 = vpop.f32.mrb[1].mxu1 }
  0xf7   : > { %v482_v17 = vpop.f32.mrb[2].mxu1 }
  0xf8   : > { %v484_v18 = vpop.f32.mrb[3].mxu1 }
  0xfd   : > { %v488_v19 = vpop.f32.mrb[4].mxu1 }
  0xfe   : > { %v490_v20 = vpop.f32.mrb[5].mxu1 }
  0xff   : > { %v492_v21 = vpop.f32.mrb[6].mxu1 }
 0x100   : > { %v494_v22 = vpop.f32.mrb[7].mxu1 }
 0x105   : > { %v2584_v23 = vpop.f32.mrb[8].mxu1 }
 0x106   : > { %v2586_v24 = vpop.f32.mrb[9].mxu1 }
 0x107   : > { %v2588_v25 = vpop.f32.mrb[10].mxu1 }
 0x108   : > { %v2590_v26 = vpop.f32.mrb[11].mxu1 }
 0x135   : > { %v2592_v27 = vpop.f32.mrb[12].mxu1 }
 0x136   : > { %v2594_v28 = vpop.f32.mrb[13].mxu1 }
 0x137   : > { %v2596_v29 = vpop.f32.mrb[14].mxu1 }
 0x138   : > { %v2598_v30 = vpop.f32.mrb[15].mxu1 }
 0x13d   : > { %v2600_v31 = vpop.f32.mrb[16].mxu1 }
 0x13e   : > { %v2602_v32 = vpop.f32.mrb[17].mxu1 }
 0x13f   : > { %v2604_v33 = vpop.f32.mrb[18].mxu1 }
 0x140   : > { %v2606_v34 = vpop.f32.mrb[19].mxu1 }
 0x145   : > { %v2608_v35 = vpop.f32.mrb[20].mxu1 }
 0x146   : > { %v2610_v36 = vpop.f32.mrb[21].mxu1 }
 0x147   : > { %v2612_v37 = vpop.f32.mrb[22].mxu1 }
 0x148   : > { %v2614_v38 = vpop.f32.mrb[23].mxu1 }
 0x14c   : > { %v1103_v40 = vpop.f32.mrb[0].mxu0 }
 0x14d   : > { %v1949_v41 = vadd.f32 %v1103_v40, %v478_v15  ;;  %v1105_v42 = vpop.f32.mrb[1].mxu0  ;;  %v2616_v43 = vpop.f32.mrb[24].mxu1 }
 0x14e   : > { %v1950_v44 = vadd.f32 %v1105_v42, %v480_v16  ;;  %v1107_v45 = vpop.f32.mrb[2].mxu0  ;;  %v2618_v46 = vpop.f32.mrb[25].mxu1 }
 0x14f   : > { %v1310_v47 = vadd.f32 %v1949_v41, %v1233_v39  ;;  %v1951_v48 = vadd.f32 %v1107_v45, %v482_v17  ;;  %v1109_v49 = vpop.f32.mrb[3].mxu0  ;;  %v2620_v50 = vpop.f32.mrb[26].mxu1 }
 0x150   : > { %v1311_v52 = vadd.f32 %v1950_v44, %v1233_v39  ;;  %v1952_v53 = vadd.f32 %v1109_v49, %v484_v18  ;;  %v2622_v54 = vpop.f32.mrb[27].mxu1  ;;  %v1253_v44 = vpop.permute.xlu0 %1252 }
 0x151   : > { %v1312_v55 = vadd.f32 %v1951_v48, %v1238_v51  ;;  %v1342_v58 = vmax.f32 %v1310_v47, 0.0 }
 0x152   : > { %v1313_v57 = vadd.f32 %v1952_v53, %v1238_v51  ;;  %v1343_v60 = vmax.f32 %v1311_v52, 0.0  ;;  %v1258_v52 = vpop.permute.xlu1 %1257 }
 0x153   : > { %v1344_v59 = vmax.f32 %v1312_v55, 0.0 }
 0x154   : > { %v1345_v61 = vmax.f32 %v1313_v57, 0.0  ;;  %v1113_v62 = vpop.f32.mrb[4].mxu0 }
 0x155   : > { %v1374_v63 = vpack.c.bf16 %v1344_v59, %v1342_v58  ;;  %v1953_v1 = vadd.f32 %v1113_v62, %v488_v19  ;;  %v1115_v2 = vpop.f32.mrb[5].mxu0  ;;  %v2624_v3 = vpop.f32.mrb[28].mxu1 }
 0x156   : > { %v1954_v4 = vadd.f32 %v1115_v2, %v490_v20  ;;  %v1117_v5 = vpop.f32.mrb[6].mxu0  ;;  %v1375_v6 = vpack.c.bf16 %v1345_v61, %v1343_v60  ;;  %v2626_v7 = vpop.f32.mrb[29].mxu1 }
 0x157   : > { %v1314_v8 = vadd.f32 %v1953_v1, %v1243_v56  ;;  %v1955_v9 = vadd.f32 %v1117_v5, %v492_v21  ;;  %v1119_v10 = vpop.f32.mrb[7].mxu0  ;;  %v2628_v11 = vpop.f32.mrb[30].mxu1 }
 0x158   : > { %v1315_v13 = vadd.f32 %v1954_v4, %v1243_v56  ;;  %v1956_v14 = vadd.f32 %v1119_v10, %v494_v22  ;;  %1470 = vmatprep.subr.bf16.mxu1 %v1375_v6  ;;  %v2630_v15 = vpop.f32.mrb[31].mxu1  ;;  %v1263_v1 = vpop.permute.xlu0 %1262 }
 0x159   : > { %v1316_v16 = vadd.f32 %v1955_v9, %v1248_v12  ;;  %1471 = vmatpush1.bf16.msra.mxu1 %v1374_v63  ;;  %v1346_v18 = vmax.f32 %v1314_v8, 0.0  ;;  %v1268_v8 = vpop.permute.xlu1 %1267 }
 0x15a   : > { %v1317_v17 = vadd.f32 %v1956_v14, %v1248_v12  ;;  %v1347_v20 = vmax.f32 %v1315_v13, 0.0 }
 0x15b   : > { %v1348_v19 = vmax.f32 %v1316_v16, 0.0 }
 0x15c   : > { %v1349_v39 = vmax.f32 %v1317_v17, 0.0  ;;  %v1123_v40 = vpop.f32.mrb[8].mxu0 }
 0x15d   : > { %v1376_v41 = vpack.c.bf16 %v1348_v19, %v1346_v18  ;;  %v1957_v21 = vadd.f32 %v1123_v40, %v2584_v23  ;;  %v1125_v42 = vpop.f32.mrb[9].mxu0 }
 0x15e   : > { %v1958_v45 = vadd.f32 %v1125_v42, %v2586_v24  ;;  %v1127_v47 = vpop.f32.mrb[10].mxu0  ;;  %v1377_v22 = vpack.c.bf16 %v1349_v39, %v1347_v20  ;;  %v1273_v39 = vpop.permute.xlu0 %1272 }
 0x15f   : > { %v1318_v48 = vadd.f32 %v1957_v21, %v1253_v44  ;;  %v1959_v49 = vadd.f32 %v1127_v47, %v2588_v25  ;;  %v1129_v51 = vpop.f32.mrb[11].mxu0 }
 0x160   : > { %v1319_v53 = vadd.f32 %v1958_v45, %v1253_v44  ;;  %v1960_v55 = vadd.f32 %v1129_v51, %v2590_v26  ;;  %1472 = vmatprep.subr.bf16.mxu1 %v1377_v22  ;;  %v1278_v44 = vpop.permute.xlu1 %1277 }
 0x161   : > { %v1320_v56 = vadd.f32 %v1959_v49, %v1258_v52  ;;  %1473 = vmatpush1.bf16.msra.mxu1 %v1376_v41  ;;  %v1350_v58 = vmax.f32 %v1318_v48, 0.0 }
 0x162   : > { %v1321_v57 = vadd.f32 %v1960_v55, %v1258_v52  ;;  %v1351_v59 = vmax.f32 %v1319_v53, 0.0 }
 0x163   : > { %v1352_v23 = vmax.f32 %v1320_v56, 0.0 }
 0x164   : > { %v1353_v60 = vmax.f32 %v1321_v57, 0.0  ;;  %v1133_v61 = vpop.f32.mrb[12].mxu0  ;;  %v1283_v57 = vpop.permute.xlu0 %1282 }
 0x165   : > { %v1378_v24 = vpack.c.bf16 %v1352_v23, %v1350_v58  ;;  %v1961_v62 = vadd.f32 %v1133_v61, %v2592_v27  ;;  %v1135_v63 = vpop.f32.mrb[13].mxu0  ;;  %v1288_v61 = vpop.permute.xlu1 %1287 }
 0x166   : > { %v1962_v25 = vadd.f32 %v1135_v63, %v2594_v28  ;;  %v1137_v2 = vpop.f32.mrb[14].mxu0  ;;  %v1379_v4 = vpack.c.bf16 %v1353_v60, %v1351_v59 }
 0x167   : > { %v1322_v5 = vadd.f32 %v1961_v62, %v1263_v1  ;;  %v1963_v26 = vadd.f32 %v1137_v2, %v2596_v29  ;;  %v1139_v6 = vpop.f32.mrb[15].mxu0 }
 0x168   : > { %v1323_v9 = vadd.f32 %v1962_v25, %v1263_v1  ;;  %v1964_v10 = vadd.f32 %v1139_v6, %v2598_v30  ;;  %1474 = vmatprep.subr.bf16.mxu1 %v1379_v4 }
 0x169   : > { %v1324_v12 = vadd.f32 %v1963_v26, %v1268_v8  ;;  %1475 = vmatpush1.bf16.msra.mxu1 %v1378_v24  ;;  %v1354_v14 = vmax.f32 %v1322_v5, 0.0 }
 0x16a   : > { %v1325_v13 = vadd.f32 %v1964_v10, %v1268_v8  ;;  %v1355_v16 = vmax.f32 %v1323_v9, 0.0  ;;  %v1293_v8 = vpop.permute.xlu0 %1292 }
 0x16b   : > { %v1356_v27 = vmax.f32 %v1324_v12, 0.0 }
 0x16c   : > { %v1357_v17 = vmax.f32 %v1325_v13, 0.0  ;;  %v1143_v18 = vpop.f32.mrb[16].mxu0 }
 0x16d   : > { %v1380_v28 = vpack.c.bf16 %v1356_v27, %v1354_v14  ;;  %v1965_v19 = vadd.f32 %v1143_v18, %v2600_v31  ;;  %v1145_v20 = vpop.f32.mrb[17].mxu0  ;;  %v1298_v14 = vpop.permute.xlu1 %1297 }
 0x16e   : > { %v1966_v29 = vadd.f32 %v1145_v20, %v2602_v32  ;;  %v1147_v40 = vpop.f32.mrb[18].mxu0  ;;  %v1381_v41 = vpack.c.bf16 %v1357_v17, %v1355_v16 }
 0x16f   : > { %v1326_v21 = vadd.f32 %v1965_v19, %v1273_v39  ;;  %v1967_v30 = vadd.f32 %v1147_v40, %v2604_v33  ;;  %v1149_v42 = vpop.f32.mrb[19].mxu0 }
 0x170   : > { %v1327_v45 = vadd.f32 %v1966_v29, %v1273_v39  ;;  %v1968_v47 = vadd.f32 %v1149_v42, %v2606_v34  ;;  %1476 = vmatprep.subr.bf16.mxu1 %v1381_v41  ;;  %v1303_v41 = vpop.permute.xlu0 %1302 }
 0x171   : > { %v1328_v22 = vadd.f32 %v1967_v30, %v1278_v44  ;;  %1477 = vmatpush1.bf16.msra.mxu1 %v1380_v28  ;;  %v1358_v49 = vmax.f32 %v1326_v21, 0.0 }
 0x172   : > { %v1329_v48 = vadd.f32 %v1968_v47, %v1278_v44  ;;  %v1359_v51 = vmax.f32 %v1327_v45, 0.0  ;;  %v1308_v45 = vpop.permute.xlu1 %1307 }
 0x173   : > { %v1360_v31 = vmax.f32 %v1328_v22, 0.0 }
 0x174   : > { %v1361_v52 = vmax.f32 %v1329_v48, 0.0  ;;  %v1153_v53 = vpop.f32.mrb[20].mxu0 }
 0x175   : > { %v1382_v32 = vpack.c.bf16 %v1360_v31, %v1358_v49  ;;  %v1969_v55 = vadd.f32 %v1153_v53, %v2608_v35  ;;  %v1155_v56 = vpop.f32.mrb[21].mxu0 }
 0x176   : > { %v1970_v33 = vadd.f32 %v1155_v56, %v2610_v36  ;;  %v1157_v58 = vpop.f32.mrb[22].mxu0  ;;  %v1383_v23 = vpack.c.bf16 %v1361_v52, %v1359_v51  ;;  %v1409_v56 = vpop.permute.xlu0 %1408 }
 0x177   : > { %v1330_v59 = vadd.f32 %v1969_v55, %v1283_v57  ;;  %v1971_v34 = vadd.f32 %v1157_v58, %v2612_v37  ;;  %v1159_v60 = vpop.f32.mrb[23].mxu0  ;;  %v2139_v55 = vld [vmem:[%s2730_s3 + $0x18] sm:$0xff]  }
 0x178   : > { %v1331_v24 = vadd.f32 %v1970_v33, %v1283_v57  ;;  %v1972_v62 = vadd.f32 %v1159_v60, %v2614_v38  ;;  %1478 = vmatprep.subr.bf16.mxu1 %v1383_v23  ;;  %v1414_v23 = vpop.permute.xlu1 %1413 }
 0x179   : > { %v1332_v63 = vadd.f32 %v1971_v34, %v1288_v61  ;;  %1479 = vmatpush1.bf16.msra.mxu1 %v1382_v32  ;;  %v1362_v25 = vmax.f32 %v1330_v59, 0.0  ;;  %v2138_v32 = vld [vmem:[%s2730_s3 + $0x10] sm:$0xff]  }
 0x17a   : > { %v1333_v1 = vadd.f32 %v1972_v62, %v1288_v61  ;;  %v1363_v2 = vmax.f32 %v1331_v24, 0.0 }
 0x17b   : > { %v1364_v35 = vmax.f32 %v1332_v63, 0.0 }
 0x17c   : > { %v1365_v4 = vmax.f32 %v1333_v1, 0.0  ;;  %v1163_v5 = vpop.f32.mrb[24].mxu0 }
 0x17d   : > { %v1384_v36 = vpack.c.bf16 %v1364_v35, %v1362_v25  ;;  %v1973_v26 = vadd.f32 %v1163_v5, %v2616_v43  ;;  %v1165_v6 = vpop.f32.mrb[25].mxu0 }
 0x17e   : > { %v1974_v37 = vadd.f32 %v1165_v6, %v2618_v46  ;;  %v1167_v9 = vpop.f32.mrb[26].mxu0  ;;  %v1385_v10 = vpack.c.bf16 %v1365_v4, %v1363_v2  ;;  %v1419_v2 = vpop.permute.xlu0 %1418 }
 0x17f   : > { %v1334_v12 = vadd.f32 %v1973_v26, %v1293_v8  ;;  %v1975_v38 = vadd.f32 %v1167_v9, %v2620_v50  ;;  %v1169_v13 = vpop.f32.mrb[27].mxu0  ;;  %v1424_v26 = vpop.permute.xlu1 %1423 }
 0x180   : > { %v1335_v27 = vadd.f32 %v1974_v37, %v1293_v8  ;;  %v1976_v16 = vadd.f32 %v1169_v13, %v2622_v54  ;;  %1480 = vmatprep.subr.bf16.mxu1 %v1385_v10 }
 0x181   : > { %v1336_v17 = vadd.f32 %v1975_v38, %v1298_v14  ;;  %1481 = vmatpush1.bf16.msra.mxu1 %v1384_v36  ;;  %v1366_v28 = vmax.f32 %v1334_v12, 0.0 }
 0x182   : > { %v1337_v18 = vadd.f32 %v1976_v16, %v1298_v14  ;;  %v1367_v19 = vmax.f32 %v1335_v27, 0.0  ;;  %v1429_v16 = vpop.permute.xlu0 %1428 }
 0x183   : > { %v1368_v43 = vmax.f32 %v1336_v17, 0.0 }
 0x184   : > { %v1369_v20 = vmax.f32 %v1337_v18, 0.0  ;;  %v1173_v39 = vpop.f32.mrb[28].mxu0 }
 0x185   : > { %v1386_v46 = vpack.c.bf16 %v1368_v43, %v1366_v28  ;;  %v1977_v29 = vadd.f32 %v1173_v39, %v2624_v3  ;;  %v1175_v40 = vpop.f32.mrb[29].mxu0 }
 0x186   : > { %v1978_v50 = vadd.f32 %v1175_v40, %v2626_v7  ;;  %v1177_v21 = vpop.f32.mrb[30].mxu0  ;;  %v1387_v30 = vpack.c.bf16 %v1369_v20, %v1367_v19  ;;  %v1434_v19 = vpop.permute.xlu1 %1433 }
 0x187   : > { %v1338_v42 = vadd.f32 %v1977_v29, %v1303_v41  ;;  %v1979_v54 = vadd.f32 %v1177_v21, %v2628_v11  ;;  %v1179_v44 = vpop.f32.mrb[31].mxu0  ;;  %v2136_v11 = vld [vmem:[%s2730_s3] sm:$0xff]  }
 0x188   : > { %v1339_v47 = vadd.f32 %v1978_v50, %v1303_v41  ;;  %v1980_v22 = vadd.f32 %v1179_v44, %v2630_v15  ;;  %1482 = vmatprep.subr.bf16.mxu1 %v1387_v30  ;;  %v2137_v15 = vld [vmem:[%s2730_s3 + $0x8] sm:$0xff]  }
 0x189   : > { %v1340_v48 = vadd.f32 %v1979_v54, %v1308_v45  ;;  %1483 = vmatpush1.bf16.msra.mxu1 %v1386_v46  ;;  %v1370_v31 = vmax.f32 %v1338_v42, 0.0  ;;  %v1439_v54 = vpop.permute.xlu0 %1438 }
 0x18a   : > { %v1341_v49 = vadd.f32 %v1980_v22, %v1308_v45  ;;  %v1371_v51 = vmax.f32 %v1339_v47, 0.0 }
 0x18b   : > { %v1372_v3 = vmax.f32 %v1340_v48, 0.0  ;;  %v1444_v48 = vpop.permute.xlu1 %1443 }
 0x18c   : > { %v1373_v52 = vmax.f32 %v1341_v49, 0.0 }
 0x18d   : > { %v1388_v53 = vpack.c.bf16 %v1372_v3, %v1370_v31 }
 0x18e   : > { %v1389_v7 = vpack.c.bf16 %v1373_v52, %v1371_v51 }
 0x190   : > { %1484 = vmatprep.subr.bf16.mxu1 %v1389_v7 }
 0x191   : > { %1485 = vmatpush1.bf16.msra.mxu1 %v1388_v53 }
 0x194   : > { %1503 = vmatmul.mubr.bf16.vlgmr.msra.gmra.mrb[32].mxu1 %v2136_v11 }
 0x195   : > { %1512 = vmatprep.mubr.bf16.mxu1 %v2224_v0 }
 0x19c   : > { %1513 = vmatmul.mubr.bf16.gmra.mrb[36].mxu1 %v2137_v15 }
 0x19d   : > { %1522 = vmatprep.mubr.bf16.mxu1 %v2224_v0 }
 0x1a4   : > { %1523 = vmatmul.mubr.bf16.gmra.mrb[40].mxu1 %v2138_v32 }
 0x1a5   : > { %1532 = vmatprep.mubr.bf16.mxu1 %v2224_v0 }
 0x1ac   : > { %1533 = vmatmul.mubr.bf16.gmra.mrb[44].mxu1 %v2139_v55 }
 0x1ad   : > { %1610 = vmatprep.mubr.bf16.mxu1 %v2224_v0 }
 0x267   : > { %v1504_v57 = vpop.f32.mrb[32].mxu1 }
 0x268   : > { %v1505_v33 = vadd.f32 %v1504_v57, %v1409_v56  ;;  %v1506_v58 = vpop.f32.mrb[33].mxu1  ;;  %v1572_v57 = vpop.permute.xlu0 %1571 }
 0x269   : > { %v1507_v59 = vadd.f32 %v1506_v58, %v1409_v56  ;;  %v1508_v34 = vpop.f32.mrb[34].mxu1  ;;  %v1567_v56 = vld [vmem:[%s2732_s5] sm:$0xf] }
 0x26a   : > { %v1509_v60 = vadd.f32 %v1508_v34, %v1414_v23  ;;  %v1510_v61 = vpop.f32.mrb[35].mxu1  ;;  %v1543_v62 = vmax.f32 %v1505_v33, 0.0 }
 0x26b   : > { %v1511_v24 = vadd.f32 %v1510_v61, %v1414_v23  ;;  %v1544_v1 = vmax.f32 %v1507_v59, 0.0 }
 0x26c   : > { %v1545_v63 = vmax.f32 %v1509_v60, 0.0 }
 0x26d   : > { %v1546_v25 = vmax.f32 %v1511_v24, 0.0 }
 0x26e   : > { %v1559_v35 = vpack.c.bf16 %v1545_v63, %v1543_v62 }
 0x26f   : > { %v1560_v4 = vpack.c.bf16 %v1546_v25, %v1544_v1  ;;  %v1514_v5 = vpop.f32.mrb[36].mxu1  ;;  %v2225_v1 = vmov 1966171168  }
 0x270   : > { %v1515_v36 = vadd.f32 %v1514_v5, %v1419_v2  ;;  %v1516_v0 = vpop.f32.mrb[37].mxu1  ;;  %v1639_v25 = vunpack.c.l.s4 %v2225_v1 }
 0x271   : > { %v1517_v6 = vadd.f32 %v1516_v0, %v1419_v2  ;;  %v1518_v8 = vpop.f32.mrb[38].mxu1  ;;  %1578 = vmatprep.subr.bf16.mxu1 %v1560_v4 }
 0x272   : > { %v1519_v37 = vadd.f32 %v1518_v8, %v1424_v26  ;;  %v1520_v9 = vpop.f32.mrb[39].mxu1  ;;  %1579 = vmatpush1.bf16.msra.mxu1 %v1559_v35  ;;  %v1547_v12 = vmax.f32 %v1515_v36, 0.0  ;;  %v1641_v35 = vlaneseq  ;;  %v1640_v0 = vunpack.c.0.s8 %v1639_v25 }
 0x273   : > { %v1521_v10 = vadd.f32 %v1520_v9, %v1424_v26  ;;  %v1548_v13 = vmax.f32 %v1517_v6, 0.0 }
 0x274   : > { %v1549_v38 = vmax.f32 %v1519_v37, 0.0  ;;  %v1642_v26 = vshrl.u32 %v1641_v35, 7  ;;  %vm1655_vm3 = vcmp.lt.s32.totalorder %v1641_v35, 256 }
 0x275   : > { %v1550_v14 = vmax.f32 %v1521_v10, 0.0 }
 0x276   : > { %v1561_v27 = vpack.c.bf16 %v1549_v38, %v1547_v12  ;;  %v1643_v10 = vsub.s32 %v1640_v0, %v1642_v26 }
 0x277   : > { %v1562_v17 = vpack.c.bf16 %v1550_v14, %v1548_v13  ;;  %v1524_v18 = vpop.f32.mrb[40].mxu1 }
 0x278   : > { %v1525_v28 = vadd.f32 %v1524_v18, %v1429_v16  ;;  %v1526_v43 = vpop.f32.mrb[41].mxu1 }
 0x279   : > { %v1527_v20 = vadd.f32 %v1526_v43, %v1429_v16  ;;  %v1528_v39 = vpop.f32.mrb[42].mxu1  ;;  %1580 = vmatprep.subr.bf16.mxu1 %v1562_v17 }
 0x27a   : > { %v1529_v46 = vadd.f32 %v1528_v39, %v1434_v19  ;;  %v1530_v29 = vpop.f32.mrb[43].mxu1  ;;  %1581 = vmatpush1.bf16.msra.mxu1 %v1561_v27  ;;  %v1551_v41 = vmax.f32 %v1525_v28, 0.0 }
 0x27b   : > { %v1531_v40 = vadd.f32 %v1530_v29, %v1434_v19  ;;  %v1552_v21 = vmax.f32 %v1527_v20, 0.0 }
 0x27c   : > { %v1553_v50 = vmax.f32 %v1529_v46, 0.0 }
 0x27d   : > { %v1554_v30 = vmax.f32 %v1531_v40, 0.0 }
 0x27e   : > { %v1563_v42 = vpack.c.bf16 %v1553_v50, %v1551_v41 }
 0x27f   : > { %v1564_v44 = vpack.c.bf16 %v1554_v30, %v1552_v21  ;;  %v1534_v45 = vpop.f32.mrb[44].mxu1 }
 0x280   : > { %v1535_v47 = vadd.f32 %v1534_v45, %v1439_v54  ;;  %v1536_v22 = vpop.f32.mrb[45].mxu1 }
 0x281   : > { %v1537_v49 = vadd.f32 %v1536_v22, %v1439_v54  ;;  %v1538_v31 = vpop.f32.mrb[46].mxu1  ;;  %1582 = vmatprep.subr.bf16.mxu1 %v1564_v44 }
 0x282   : > { %v1539_v3 = vadd.f32 %v1538_v31, %v1444_v48  ;;  %v1540_v51 = vpop.f32.mrb[47].mxu1  ;;  %1583 = vmatpush1.bf16.msra.mxu1 %v1563_v42  ;;  %v1555_v53 = vmax.f32 %v1535_v47, 0.0 }
 0x283   : > { %v1541_v52 = vadd.f32 %v1540_v51, %v1444_v48  ;;  %v1556_v11 = vmax.f32 %v1537_v49, 0.0 }
 0x284   : > { %v1557_v7 = vmax.f32 %v1539_v3, 0.0 }
 0x285   : > { %v1558_v15 = vmax.f32 %v1541_v52, 0.0 }
 0x286   : > { %v1565_v32 = vpack.c.bf16 %v1557_v7, %v1555_v53 }
 0x287   : > { %v1566_v55 = vpack.c.bf16 %v1558_v15, %v1556_v11 }
 0x289   : > { %1584 = vmatprep.subr.bf16.mxu1 %v1566_v55 }
 0x28a   : > { %1585 = vmatpush1.bf16.msra.mxu1 %v1565_v32 }
 0x28d   : > { %1938 = vmatmul.mubr.msk.bf16.vlgmr.msra.gmra.mrb[48].mxu1 %vm1574_vm2, %v1567_v56 }
 0x360   : > { %v1612_v33 = vpop.f32.mrb[48].mxu1 }
 0x361   : > { %v1613_v58 = vadd.f32 %v1612_v33, %v1572_v57  ;;  %v1614_v23 = vpop.f32.mrb[49].mxu1 }
 0x362   : > { %v1615_v59 = vadd.f32 %v1614_v23, %v1572_v57  ;;  %v1616_v34 = vpop.f32.mrb[50].mxu1 }
 0x363   : > { %v1619_v60 = vrot.slane %v1613_v58, 4  ;;  %v1617_v61 = vpop.f32.mrb[51].mxu1 }
 0x364   : > { %v1625_v24 = vrot.slane %v1615_v59, 4 }
 0x365   : > { %v1620_v62 = vmax.f32 %v1613_v58, %v1619_v60 }
 0x366   : > { %v1626_v63 = vmax.f32 %v1615_v59, %v1625_v24 }
 0x367   : > { %v1621_v2 = vrot.slane %v1620_v62, 2 }
 0x368   : > { %v1627_v4 = vrot.slane %v1626_v63, 2 }
 0x369   : > { %v1622_v5 = vmax.f32 %v1620_v62, %v1621_v2 }
 0x36a   : > { %v1628_v36 = vmax.f32 %v1626_v63, %v1627_v4 }
 0x36b   : > { %v1623_v6 = vrot.slane %v1622_v5, 1 }
 0x36c   : > { %v1629_v8 = vrot.slane %v1628_v36, 1 }
 0x36d   : > { %v1624_v37 = vmax.f32 %v1622_v5, %v1623_v6 }
 0x36e   : > { %v1630_v9 = vmax.f32 %v1628_v36, %v1629_v8 }
 0x370   : > { %v1637_v12 = vcombine.low %v1624_v37, %v1630_v9 }
 0x372   : > { %v1644_v38 = vrot.slane %v1637_v12, %v1643_v10 }
 0x374   : > { %v1651_v13 = vrot.slane %v1644_v38, %v1643_v10 }
 0x376   : > { %1657 = vst.msk [vmem:[%s313_s16] sm:$0x3] %vm1655_vm3, %v1651_v13 }
 0x37d   : > { %v1690_v14 = vld [vmem:[%s313_s16] sm:$0x3] }
 0x37e   : > { %v1939_v27 = vmul.f32 -1.442695, %v1690_v14 }
 0x380   : > { %2140 = vpow2.f32 %v1939_v27 }
 0x38a   : > { %v2141_v16 = vpop.eup %2140 }
 0x38b   : > { %v1694_v17 = vadd.f32 1.0, %v2141_v16 }
 0x38d   : > { %2142 = vrcp.f32 %v1694_v17 }
 0x397   : > { %v2143_v18 = vpop.eup %2142 }
 0x398   : > { %1701 = vst.msk [vmem:[%s313_s16] sm:$0x3] %vm1655_vm3, %v2143_v18 }
 0x399   : > { %2157 = shalt.err (!%p2154_p5)
}
 0x39a   : > { %s2158_s10 = scalar_lea.hbm %s2680_s22, 32  ;;  %s2162_s16 = scalar_lea.hbm %s2734_s7, 64 }
 0x39b   : > { %p2159_p6 = scmp.ne.s32.totalorder %s2680_s22, %s2158_s10  ;;  %p2163_p10 = scmp.lt.u32.totalorder %s2680_s22, %s2734_s7 }
 0x39c   : > { %p2164_p11 = scmp.lt.u32.totalorder %s2162_s16, %s2158_s10  ;;  %p2166_p13 = scmp.lt.u32.totalorder %s2158_s10, %s2680_s22 }
 0x39d   : > { %p2160_p7 = pnand %p2159_p6, %p2307_p4 }
 0x39e   : > { %p2165_p12 = por %p2164_p11, %p2163_p10 }
 0x39f   : > { %p2161_p9 = pneg %p2160_p7 }
 0x3a0   : > { %p2167_p0 = por %p2166_p13, %p2165_p12 }
 0x3a2   : > { %p2168_p1 = pnand %p2167_p0, %p2161_p9 }
 0x3a4   : > { %2171 = shalt.err (!%p2168_p1)
}
 0x3a5   : > { %2045 = dma.vmem_to_hbm [thread:$0]  (%p2307_p4), %s2682_s18, 32, %s2680_s22, %s1703_s23  }
 0x3a6 PF: > { %p2051_p2 = scmp.ge.s32.totalorder %s2222_s29, 2  ;;  %s1731_s21 = sand.u32 1, %s2202_s24  }
 0x3a7   : > { %s1732_s19 = scalar_lea.sflag [#allocation3], %s1731_s21 }
 0x3a8   : > { %p2048_p3 = pnand %p2051_p2, %p2314_p8 }
 0x3aa   : > { %2197 = dma.done.wait (!%p2048_p3), %s1732_s19, 32  }
 0x3ab   : > { %2199 = vsyncadd (!%p2048_p3), %s1732_s19, 4294967264  ;;  %s20_s29 = sadd.s32 1, %s2222_s29   ;;  %s2737_s24 = smov %s2206_s25 }
 0x3ac   : > { %p17_p5 = scmp.ge.s32.totalorder %s20_s29, 4   ;;  %s2738_s25 = smov %s2210_s26 }
 0x3ad   : > { %s2739_s26 = smov %s2320_s14  ;;  %s2740_s27 = smov %s2218_s28 }
 0x3ae   : > { %s2741_s28 = smov %s2743_s9  ;;  %19 = sbr.rel (!%p17_p5) target bundleno = 4 (0x4), region = 101 }
 0x3b5   :  { %1737 = vsyncpa [#allocation3], 1 }
 0x3b6   :  { %1739 = vsyncpa [#allocation3 + $0x1], 1 }

</bundles_post_ra>
